<compile_context>
chip_gen: v7x
topology: tpu7x:2x2x1
jax: 0.10.0
libtpu: 0.0.40
codegen_flags: <defaults>
</compile_context>

<pallas_src>
import functools

import jax
import jax.numpy as jnp
from jax.experimental import pallas as pl
from jax.experimental.pallas import tpu as pltpu

_EPS = 1e-6   # F.pairwise_distance default eps (added to the difference)
_LANE = 128   # TPU vreg lane width


def _round_up(x, m):
    return ((x + m - 1) // m) * m


def _vmem_capacity_bytes():
    try:
        return int(pltpu.get_tpu_info().vmem_capacity_bytes)
    except Exception:
        return 64 * 1024 * 1024   # conservative fallback: v7x per-TC VMEM


def _contrastive_kernel(o1_ref, o2_ref, lbl_ref, out_ref, *, margin, batch, tile_b):
    """One batch tile.

    o1_ref, o2_ref : [tile_b, D] feature blocks (any float dtype)
    lbl_ref        : [1, tile_b] lane-dense f32 labels
    out_ref        : [1, 1]      SMEM per-tile partial sum
    """
    i = pl.program_id(0)

    o1 = o1_ref[...].astype(jnp.float32)          # [tile_b, D]
    o2 = o2_ref[...].astype(jnp.float32)          # [tile_b, D]
    diff = (o1 - o2) + _EPS
    diff2 = diff * diff

    # Lane-dense row reduction on the (otherwise idle) MXU:
    #   sq[0, b] = sum_d diff2[b, d]   -> [1, tile_b]
    # Avoids any [tile_b, 1] lane-sparse intermediate (1 useful lane of 128)
    # and matches the lane-dense label layout below.
    ones = jnp.ones((1, diff2.shape[-1]), dtype=jnp.float32)
    sq = jax.lax.dot_general(
        ones, diff2,
        dimension_numbers=(((1,), (1,)), ((), ())),
        preferred_element_type=jnp.float32,
    )                                              # [1, tile_b] == d^2

    lbl = lbl_ref[...].astype(jnp.float32)         # [1, tile_b]
    dist = jnp.sqrt(sq)                            # euclidean_distance
    hinge = jnp.maximum(margin - dist, 0.0)        # clamp(margin - d, min=0)
    per_pair = (1.0 - lbl) * sq + lbl * (hinge * hinge)

    last = pl.num_programs(0) - 1

    # Hot path: full tiles need no padding mask.
    @pl.when(i != last)
    def _():
        out_ref[0, 0] = jnp.sum(per_pair)

    # Only the last (possibly partial) tile masks padded rows (jnp.where is a
    # select, so garbage/NaN from padded rows cannot leak into the sum).
    @pl.when(i == last)
    def _():
        col = i * tile_b + jax.lax.broadcasted_iota(jnp.int32, per_pair.shape, 1)
        out_ref[0, 0] = jnp.sum(jnp.where(col < batch, per_pair, 0.0))


def contrastive_loss(output1, output2, label, margin=2.0, tile_b=None):
    """Pallas implementation of ContrastiveLoss.forward. Returns a scalar f32."""
    assert output1.shape == output2.shape and output1.ndim == 2
    B, D = output1.shape
    in_itemsize = jnp.dtype(output1.dtype).itemsize

    # Labels as a lane-dense (1, B) f32 strip (a (B, 1) block pads 1 -> 128 lanes).
    label = jnp.reshape(label.astype(jnp.float32), (1, B))

    # ---------------- generation-aware tile sizing ----------------
    vmem_cap = _vmem_capacity_bytes()
    # Target ~half of physical VMEM for this kernel (v5e/v6e: 64 of 128 MiB,
    # v7x: 32 of 64 MiB); leave the rest for Mosaic internals.
    vmem_target = min(vmem_cap // 2, 96 * 1024 * 1024)

    # Double-buffered VMEM bytes per batch row resident at any time:
    #   2 feature inputs x 2 pipeline buffers       -> 4 * D * itemsize
    #   f32 upcast / diff / diff^2 temporaries      -> ~3 * D * 4
    #   label strip (1, tile_b), padded to 8 sublanes, x2 buffers -> 64
    per_row_bytes = 4 * D * in_itemsize + 12 * D + 64

    if tile_b is None:
        budget_rows = max(1, int(0.8 * vmem_target) // per_row_bytes)
        # ~4 MiB per feature block keeps the stream near HBM roofline while
        # bounding vreg pressure of the (1, tile_b) per-row vectors.
        cap_rows = max(_LANE, (4 * 1024 * 1024) // max(1, D * in_itemsize))
        tile_b = min(budget_rows, cap_rows)
    tile_b = int(tile_b)

    if tile_b >= B or B <= _LANE:
        # Whole batch fits in one block (block == full array dims is always
        # legal).  For large B still split in two so the 'parallel' grid axis
        # gives v7x's second TensorCore half the batch.
        tile_b = B
        if B >= 2 * _LANE:
            tile_b = _round_up(pl.cdiv(B, 2), _LANE)
    else:
        # When tiling, keep blocks lane-aligned: multiple of 128 rows (also a
        # multiple of every dtype's sublane packing for the feature blocks).
        tile_b = max(_LANE, (tile_b // _LANE) * _LANE)

    num_tiles = pl.cdiv(B, tile_b)

    # Explicit scoped-VMEM limit covering the actual footprint (with headroom),
    # never more than ~15/16 of physical capacity.
    # TODO(synk): for D so large that even a 128-row block exceeds physical
    # VMEM, add a second "arbitrary" grid axis over D and accumulate sq_dist.
    footprint = tile_b * per_row_bytes + (2 << 20)
    vmem_limit = int(min(vmem_cap * 15 // 16, max(vmem_target, footprint)))

    kernel = functools.partial(
        _contrastive_kernel, margin=float(margin), batch=B, tile_b=tile_b)

    cost = pl.CostEstimate(
        flops=4 * B * D + 10 * B,
        transcendentals=B,                                   # sqrt per row
        bytes_accessed=2 * B * D * in_itemsize + B * 4 + num_tiles * 4,
    )

    partials = pl.pallas_call(
        kernel,
        out_shape=jax.ShapeDtypeStruct((num_tiles, 1), jnp.float32),
        grid=(num_tiles,),
        in_specs=[
            pl.BlockSpec((tile_b, D), lambda i: (i, 0)),
            pl.BlockSpec((tile_b, D), lambda i: (i, 0)),
            pl.BlockSpec((1, tile_b), lambda i: (0, i)),     # lane-dense labels
        ],
        out_specs=pl.BlockSpec(
            (1, 1), lambda i: (i, 0), memory_space=pltpu.MemorySpace.SMEM),
        compiler_params=pltpu.CompilerParams(
            dimension_semantics=("parallel",),               # 2-TC split on v7x
            vmem_limit_bytes=vmem_limit),
        cost_estimate=cost,
    )(output1, output2, label)

    # Finish the mean over the tiny per-tile partials in JAX.
    return jnp.sum(partials) * (1.0 / B)


def _reference(output1, output2, label, margin=2.0):
    diff = (output1.astype(jnp.float32) - output2.astype(jnp.float32)) + _EPS
    d = jnp.sqrt(jnp.sum(diff * diff, axis=-1, keepdims=True))
    lbl = jnp.reshape(label.astype(jnp.float32), (-1, 1))
    hinge = jnp.maximum(margin - d, 0.0)
    return jnp.mean((1.0 - lbl) * (d * d) + lbl * (hinge * hinge))


if __name__ == "__main__":
    keys = jax.random.split(jax.random.PRNGKey(0), 6)
    margin = 2.0

    # Case 1: small batch -> single full-array tile; B is not a multiple of 8.
    B1, D1 = 60, 32
    o1 = jax.random.normal(keys[0], (B1, D1), jnp.float32)
    o2 = jax.random.normal(keys[1], (B1, D1), jnp.float32)
    lbl1 = jax.random.bernoulli(keys[2], 0.5, (B1, 1)).astype(jnp.float32)
    ref1 = _reference(o1, o2, lbl1, margin)
    out1 = jax.block_until_ready(contrastive_loss(o1, o2, lbl1, margin))
    assert jnp.allclose(out1, ref1, rtol=1e-4, atol=1e-5), (out1, ref1)

    # Case 2: multi-tile grid with a partial last tile (exercises lane-dense
    # 128-wide label blocks, the last-tile pl.when mask, and the parallel grid).
    B2, D2 = 300, 32
    o1b = jax.random.normal(keys[3], (B2, D2), jnp.float32)
    o2b = jax.random.normal(keys[4], (B2, D2), jnp.float32)
    lbl2 = jax.random.bernoulli(keys[5], 0.5, (B2, 1)).astype(jnp.float32)
    ref2 = _reference(o1b, o2b, lbl2, margin)

    out2 = jax.block_until_ready(
        contrastive_loss(o1b, o2b, lbl2, margin, tile_b=128))   # 3 tiles, last partial
    assert jnp.allclose(out2, ref2, rtol=1e-4, atol=1e-5), (out2, ref2)

    out3 = jax.block_until_ready(
        contrastive_loss(o1b, o2b, lbl2, margin))               # auto tile, >=2 steps
    assert jnp.allclose(out3, ref2, rtol=1e-4, atol=1e-5), (out3, ref2)

    # Case 3: bf16 features (halves HBM traffic on this bandwidth-bound loss).
    o1h, o2h = o1b.astype(jnp.bfloat16), o2b.astype(jnp.bfloat16)
    ref3 = _reference(o1h, o2h, lbl2, margin)
    out4 = jax.block_until_ready(contrastive_loss(o1h, o2h, lbl2, margin))
    assert jnp.allclose(out4, ref3, rtol=1e-4, atol=1e-4), (out4, ref3)

    print("KERNEL_OK")
</pallas_src>

<mosaic_0001>
module attributes {stable_mosaic.version = 11 : i64} {
  func.func @_contrastive_kernel(%arg0: i32, %arg1: memref<60x32xf32, #tpu.memory_space<vmem>>, %arg2: memref<60x32xf32, #tpu.memory_space<vmem>>, %arg3: memref<1x60xf32, #tpu.memory_space<vmem>>, %arg4: memref<1x1xf32, #tpu.memory_space<smem>>) attributes {dimension_semantics = [#tpu.dimension_semantics<parallel>], iteration_bounds = array<i64: 1>, scalar_prefetch = 0 : i64, scratch_operands = 0 : i64, tpu.core_type = #tpu.core_type<tc>, window_params = [{transform_indices = @transform_0, window_bounds = array<i64: 60, 32>}, {transform_indices = @transform_1, window_bounds = array<i64: 60, 32>}, {transform_indices = @transform_2, window_bounds = array<i64: 1, 60>}, {transform_indices = @transform_3, window_bounds = array<i64: 1, 1>}]} {
    %c0 = arith.constant 0 : index
    %c0_0 = arith.constant 0 : index
    %0 = vector.load %arg1[%c0, %c0_0] : memref<60x32xf32, #tpu.memory_space<vmem>>, vector<60x32xf32>
    %c0_1 = arith.constant 0 : index
    %c0_2 = arith.constant 0 : index
    %1 = vector.load %arg2[%c0_1, %c0_2] : memref<60x32xf32, #tpu.memory_space<vmem>>, vector<60x32xf32>
    %2 = arith.subf %0, %1 : vector<60x32xf32>
    %cst = arith.constant 9.99999997E-7 : f32
    %3 = vector.broadcast %cst : f32 to vector<60x32xf32>
    %4 = arith.addf %2, %3 : vector<60x32xf32>
    %5 = arith.mulf %4, %4 : vector<60x32xf32>
    %cst_3 = arith.constant 1.000000e+00 : f32
    %6 = vector.broadcast %cst_3 : f32 to vector<1x32xf32>
    %cst_4 = arith.constant dense<0.000000e+00> : vector<1x60xf32>
    %7 = tpu.matmul %6, %5, %cst_4 {dimension_numbers = #tpu.dot_dimension_numbers<[1], [1], [0], [0], [0, 0, 1, 0], [], []>} : vector<1x32xf32>, vector<60x32xf32>, vector<1x60xf32> -> vector<1x60xf32>
    %c0_5 = arith.constant 0 : index
    %c0_6 = arith.constant 0 : index
    %8 = vector.load %arg3[%c0_5, %c0_6] : memref<1x60xf32, #tpu.memory_space<vmem>>, vector<1x60xf32>
    %9 = math.sqrt %7 : vector<1x60xf32>
    %cst_7 = arith.constant 2.000000e+00 : f32
    %10 = vector.broadcast %cst_7 : f32 to vector<1x60xf32>
    %11 = arith.subf %10, %9 : vector<1x60xf32>
    %cst_8 = arith.constant 0.000000e+00 : f32
    %12 = vector.broadcast %cst_8 : f32 to vector<1x60xf32>
    %13 = arith.maximumf %11, %12 : vector<1x60xf32>
    %cst_9 = arith.constant 1.000000e+00 : f32
    %14 = vector.broadcast %cst_9 : f32 to vector<1x60xf32>
    %15 = arith.subf %14, %8 : vector<1x60xf32>
    %16 = arith.mulf %15, %7 : vector<1x60xf32>
    %17 = arith.mulf %13, %13 : vector<1x60xf32>
    %18 = arith.mulf %8, %17 : vector<1x60xf32>
    %19 = arith.addf %16, %18 : vector<1x60xf32>
    %c0_i32 = arith.constant 0 : i32
    %20 = arith.cmpi ne, %arg0, %c0_i32 : i32
    %21 = arith.extui %20 : i1 to i32
    %c0_i32_10 = arith.constant 0 : i32
    %22 = arith.cmpi ne, %21, %c0_i32_10 : i32
    scf.if %22 {
      %26 = vector.shape_cast %19 : vector<1x60xf32> to vector<1x1x60xf32>
      %cst_13 = arith.constant dense<0.000000e+00> : vector<1xf32>
      %27 = vector.multi_reduction <add>, %26, %cst_13 [1, 2] : vector<1x1x60xf32> to vector<1xf32>
      %28 = vector.shape_cast %27 : vector<1xf32> to vector<1x1x1xf32>
      %29 = vector.extract %28[0, 0, 0] : f32 from vector<1x1x1xf32>
      %c0_14 = arith.constant 0 : index
      %c0_15 = arith.constant 0 : index
      %30 = memref.load %arg4[%c0_14, %c0_15] : memref<1x1xf32, #tpu.memory_space<smem>>
      memref.store %29, %arg4[%c0_14, %c0_15] : memref<1x1xf32, #tpu.memory_space<smem>>
    } else {
    }
    %c0_i32_11 = arith.constant 0 : i32
    %23 = arith.cmpi eq, %arg0, %c0_i32_11 : i32
    %24 = arith.extui %23 : i1 to i32
    %c0_i32_12 = arith.constant 0 : i32
    %25 = arith.cmpi ne, %24, %c0_i32_12 : i32
    scf.if %25 {
      %c60_i32 = arith.constant 60 : i32
      %26 = arith.muli %arg0, %c60_i32 : i32
      %27 = tpu.iota {dimensions = array<i32: 1>} : vector<1x60xi32>
      %28 = vector.broadcast %26 : i32 to vector<1x60xi32>
      %29 = arith.addi %28, %27 : vector<1x60xi32>
      %c60_i32_13 = arith.constant 60 : i32
      %30 = vector.broadcast %c60_i32_13 : i32 to vector<1x60xi32>
      %31 = arith.cmpi slt, %29, %30 : vector<1x60xi32>
      %cst_14 = arith.constant 0.000000e+00 : f32
      %32 = vector.broadcast %cst_14 : f32 to vector<1x60xf32>
      %33 = arith.select %31, %19, %32 : vector<1x60xi1>, vector<1x60xf32>
      %34 = vector.shape_cast %33 : vector<1x60xf32> to vector<1x1x60xf32>
      %cst_15 = arith.constant dense<0.000000e+00> : vector<1xf32>
      %35 = vector.multi_reduction <add>, %34, %cst_15 [1, 2] : vector<1x1x60xf32> to vector<1xf32>
      %36 = vector.shape_cast %35 : vector<1xf32> to vector<1x1x1xf32>
      %37 = vector.extract %36[0, 0, 0] : f32 from vector<1x1x1xf32>
      %c0_16 = arith.constant 0 : index
      %c0_17 = arith.constant 0 : index
      %38 = memref.load %arg4[%c0_16, %c0_17] : memref<1x1xf32, #tpu.memory_space<smem>>
      memref.store %37, %arg4[%c0_16, %c0_17] : memref<1x1xf32, #tpu.memory_space<smem>>
    } else {
    }
    return
  }
  func.func @transform_0(%arg0: i32) -> (i32, i32) {
    %c0_i32 = arith.constant 0 : i32
    %c0_i32_0 = arith.constant 0 : i32
    return %arg0, %c0_i32 : i32, i32
  }
  func.func @transform_1(%arg0: i32) -> (i32, i32) {
    %c0_i32 = arith.constant 0 : i32
    %c0_i32_0 = arith.constant 0 : i32
    return %arg0, %c0_i32 : i32, i32
  }
  func.func @transform_2(%arg0: i32) -> (i32, i32) {
    %c0_i32 = arith.constant 0 : i32
    %c0_i32_0 = arith.constant 0 : i32
    return %c0_i32, %arg0 : i32, i32
  }
  func.func @transform_3(%arg0: i32) -> (i32, i32) {
    %c0_i32 = arith.constant 0 : i32
    %c0_i32_0 = arith.constant 0 : i32
    return %arg0, %c0_i32 : i32, i32
  }
}

</mosaic_0001>

<bundles_post_ra>
// kernel: tpu_custom_call.1
= control target key start
LH: loop header
LB: loop body
LE: loop exit
PB: predicated region body
PF: predicated region fallthrough
CT: control target
= control target key end

     0   :  { %v296_v3 = vmov 0.0|0.0   ;;  %vm55_vm0 = vcmask 261120   ;;  %vm297_vm1 = vmmov 0   ;;  %v298_v11 = vmov 0.0   ;;  %s399_s0 = inlined_call_operand.vmem [shape: f32[60,32], index: 0, kind: input, shape index: {}]   ;;  %s400_s1 = inlined_call_operand.vmem [shape: f32[60,32], index: 1, kind: input, shape index: {}]   ;;  %s401_s2 = inlined_call_operand.vmem [shape: f32[1,60], index: 2, kind: input, shape index: {}]   ;;  %s402_s3 = inlined_call_operand.hbm [shape: f32[1,1], index: 3, kind: output, shape index: {}]  }
   0x1   :  { %v15_v0 = vld [vmem:[%s399_s0] sm:$0xff]  ;;  %v16_v1 = vld [vmem:[%s399_s0 + $0x8] sm:$0xff]  ;;  %259 = vmatprep.subr.bf16.mxu0 %v296_v3  ;;  %v17_v6 = vld [vmem:[%s399_s0 + $0x10] sm:$0xff]  ;;  %256 = vmatprep.mubr.msk.f32.mxu0 %vm297_vm1, %v298_v11 }
   0x2   :  { %v23_v2 = vld [vmem:[%s400_s1] sm:$0xff]  ;;  %v24_v4 = vld [vmem:[%s400_s1 + $0x8] sm:$0xff]  ;;  %v18_v8 = vld [vmem:[%s399_s0 + $0x18] sm:$0xff] }
   0x3   :  { %v31_v5 = vsub.f32 %v15_v0, %v23_v2  ;;  %v32_v7 = vsub.f32 %v16_v1, %v24_v4  ;;  %v25_v9 = vld [vmem:[%s400_s1 + $0x10] sm:$0xff]  ;;  %v26_v10 = vld [vmem:[%s400_s1 + $0x18] sm:$0xff]  ;;  %vm347_vm2 = vmpackc.low %vm55_vm0, %vm55_vm0 }
   0x4   :  { %v33_v13 = vsub.f32 %v17_v6, %v25_v9  ;;  %v34_v14 = vsub.f32 %v18_v8, %v26_v10  ;;  %v19_v18 = vld [vmem:[%s399_s0 + $0x20] sm:$0xff] }
   0x5   :  { %v39_v12 = vadd.f32 1e-06, %v31_v5  ;;  %v40_v15 = vadd.f32 1e-06, %v32_v7 }
   0x6   :  { %v41_v20 = vadd.f32 1e-06, %v33_v13  ;;  %v42_v21 = vadd.f32 1e-06, %v34_v14 }
   0x7   :  { %v47_v16 = vmul.f32 %v39_v12, %v39_v12  ;;  %v48_v19 = vmul.f32 %v40_v15, %v40_v15 }
   0x8   :  { %8 = vsyncpa [#allocation3], 0  ;;  %v20_v22 = vld [vmem:[%s399_s0 + $0x28] sm:$0xff]  ;;  %v27_v23 = vld [vmem:[%s400_s1 + $0x20] sm:$0xff]  ;;  %v49_v26 = vmul.f32 %v41_v20, %v41_v20  ;;  %v50_v27 = vmul.f32 %v42_v21, %v42_v21  ;;  %v299_v47 = vmov 1.0   ;;  %v190_v56 = vlaneseq  ;;  %s284_s19 = scalar_lea.hbm %s402_s3, 16 }
   0x9   :  { %v28_v24 = vld [vmem:[%s400_s1 + $0x28] sm:$0xff]  ;;  %v260_v25 = vpack.c.bf16 %v48_v19, %v47_v16  ;;  %v35_v28 = vsub.f32 %v19_v18, %v27_v23  ;;  %v21_v33 = vld [vmem:[%s399_s0 + $0x30] sm:$0xff]  ;;  %v22_v34 = vld [vmem:[%s399_s0 + $0x38] sm:$0xf]  ;;  %vm196_vm6 = vcmask 483328   ;;  %p285_p0 = scmp.ne.s32.totalorder %s402_s3, %s284_s19  ;;  %p288_p1 = scmp.lt.u32.totalorder %s284_s19, %s402_s3 }
   0xa   :  { %v36_v29 = vsub.f32 %v20_v22, %v28_v24  ;;  %v264_v30 = vpack.c.bf16 %v50_v27, %v49_v26  ;;  %v29_v35 = vld [vmem:[%s400_s1 + $0x30] sm:$0xff]  ;;  %v30_v36 = vld [vmem:[%s400_s1 + $0x38] sm:$0xf]  ;;  %v153_v54 = vld [vmem:[%s401_s2] sm:$0x1]  ;;  %v191_v60 = vand.u32 127, %v190_v56 }
   0xb   :  { %262 = vmatpush3.bf16.xpose.msk.msra.mxu0 %vm347_vm2, %v260_v25  ;;  %v43_v31 = vadd.f32 1e-06, %v35_v28  ;;  %v37_v39 = vsub.f32 %v21_v33, %v29_v35  ;;  %v38_v40 = vsub.f32 %v22_v34, %v30_v36  ;;  %v163_v59 = vsub.f32 1.0, %v153_v54  ;;  %p290_p2 = pnand %p288_p1, %p285_p0 }
   0xc   :  { %263 = vmatprep.subr.bf16.mxu0 %v296_v3  ;;  %v44_v32 = vadd.f32 1e-06, %v36_v29  ;;  %vm194_vm5 = vcmp.lt.s32.totalorder %v191_v60, 60 }
   0xd   :  { %v51_v37 = vmul.f32 %v43_v31, %v43_v31  ;;  %v45_v42 = vadd.f32 1e-06, %v37_v39  ;;  %v46_v43 = vadd.f32 1e-06, %v38_v40 }
   0xe   :  { %v52_v38 = vmul.f32 %v44_v32, %v44_v32 }
   0xf   :  { %v53_v44 = vmul.f32 %v45_v42, %v45_v42  ;;  %v54_v45 = vmul.f32 %v46_v43, %v46_v43 }
  0x10   :  { %v268_v41 = vpack.c.bf16 %v52_v38, %v51_v37 }
  0x11   :  { %v272_v46 = vpack.c.bf16 %v54_v45, %v53_v44 }
  0x13   :  { %266 = vmatpush3.bf16.xpose.msk.msra.mxu0 %vm347_vm2, %v264_v30 }
  0x14   :  { %267 = vmatprep.subr.bf16.mxu0 %v296_v3 }
  0x1b   :  { %270 = vmatpush3.bf16.xpose.msk.msra.mxu0 %vm347_vm2, %v268_v41 }
  0x1c   :  { %271 = vmatprep.subr.bf16.mxu0 %v296_v3 }
  0x23   :  { %274 = vmatpush3.bf16.xpose.msk.msra.mxu0 %vm347_vm2, %v272_v46 }
  0x2a   :  { %257 = vmatmul.mubr.msk.f32.vlgmr.msra.gmra.mrb[0].mxu0 %vm55_vm0, %v299_v47 }
  0xfd   :  { %v149_v48 = vpop.f32.mrb[0].mxu0 }
  0xfe   :  { %282 = vrsqrt.f32 %v149_v48  ;;  %v258_v49 = vpop.f32.mrb[1].mxu0  ;;  %vm156_vm3 = vcmp.eq.f32.partialorder %v149_v48, inf  ;;  %v159_v52 = vand.u32 2147483648, %v149_v48  ;;  %vm158_vm4 = vcmp.eq.f32.partialorder %v149_v48, 0.0 }
  0xff   :  { %v164_v62 = vmul.f32 %v163_v59, %v149_v48 }
 0x108   :  { %v283_v50 = vpop.eup %282 }
 0x109   :  { %v155_v51 = vmul.f32 %v283_v50, %v149_v48 }
 0x10b   :  { %v157_v53 = vsel %vm156_vm3, %v149_v48, %v155_v51 }
 0x10c   :  { %v160_v55 = vsel %vm158_vm4, %v159_v52, %v157_v53 }
 0x10d   :  { %v161_v57 = vsub.f32 2.0, %v160_v55 }
 0x10f   :  { %v162_v58 = vmax.f32 %v161_v57, 0.0 }
 0x111   :  { %v165_v61 = vmul.f32 %v162_v58, %v162_v58 }
 0x113   :  { %v166_v63 = vmul.f32 %v165_v61, %v153_v54 }
 0x115   :  { %v167_v0 = vadd.f32 %v166_v63, %v164_v62 }
 0x117   :  { %v195_v1 = vsel %vm194_vm5, %v167_v0, 0.0 }
 0x118   :  { %v197_v2 = vsel %vm196_vm6, %v195_v1, 0.0 }
 0x119   :  { %198 = vadd.xlane.f32.xlu0 %v197_v2 }
 0x1a6   :  { %v199_v3 = vpop.xlane.xlu0 %198 }
 0x1a7   :  { %v200_v4 = vrot.slane %v199_v3, 4 }
 0x1a9   :  { %v201_v5 = vadd.f32 %v200_v4, %v199_v3 }
 0x1ab   :  { %v202_v6 = vrot.slane %v201_v5, 2 }
 0x1ad   :  { %v203_v7 = vadd.f32 %v202_v6, %v201_v5 }
 0x1af   :  { %v204_v8 = vrot.slane %v203_v7, 1 }
 0x1b1   :  { %v205_v9 = vadd.f32 %v204_v8, %v203_v7 }
 0x1b3   :  { %275 = vpush %v205_v9 }
 0x1e4   :  { %s276_s2 = spop %275 }
 0x1e5   :  { %208 = sst [smem:[#allocation2]] %s276_s2 }
 0x1e6   :  { %293 = shalt.err (!%p290_p2)
}
 0x1e7   :  { %s300_s24 = smov [#allocation2]  }
 0x1e8   :  { %216 = dma.smem_to_hbm %s300_s24, 16, %s402_s3, [#allocation3]  }
 0x1e9   :  { %294 = dma.done.wait [#allocation3], 16  }
 0x1ea   :  { %295 = vsyncadd [#allocation3], 4294967280 }
 0x1eb   :  { %220 = sfence }
 0x1ec   :  { %221 = vsyncpa [#allocation3], 1 }

</bundles_post_ra>
